<compile_context>
chip_gen: v7x
topology: tpu7x:2x2x1
jax: 0.10.0
libtpu: 0.0.40
codegen_flags: <defaults>
</compile_context>

<pallas_src>
import math
import numpy as np
import jax
import jax.numpy as jnp
from jax.experimental import pallas as pl
from jax.experimental.pallas import tpu as pltpu


# ----------------------------------------------------------------------------
# Pallas kernel: one invocation handles every numerical feature for a batch tile.
#   x_ref    : (Bb, F)       numerical features (batch tile)
#   bnd_ref  : (F, 1, D)     sorted quantization bounds per feature
#   w_ref    : (F, D, F*T)   fused per-feature weight, block-diagonal over the
#                            F*T output columns (only cols [i*T,(i+1)*T) nonzero)
#   wnum_ref : (F, 1, F*T)   Tokenizer.weight[i+1] placed in its column block
#   bias_ref : (1, F*T)      bias[:F] + Woh[:,0,:] + colsum(Wor), flattened
#   out_ref  : (Bb, F*T)     numerical tokens, lane-dense flat layout
# ----------------------------------------------------------------------------
def _tokenizer_kernel(x_ref, bnd_ref, w_ref, wnum_ref, bias_ref, out_ref):
    x = x_ref[...]                                            # (Bb, F) f32
    F = bnd_ref.shape[0]

    acc = None
    for i in range(F):            # static unroll; F is small for tabular data
        xc = x[:, i:i + 1]                                    # (Bb, 1)
        # lowerbound = X[:, i, None] > bounds[None, :]
        lower = (xc > bnd_ref[i]).astype(jnp.float32)         # (Bb, D)
        # fused QE matmul: lands only in this feature's T-wide column block,
        # but the MXU push / store is the full lane-dense (Bb, F*T) slab.
        term = jnp.dot(lower, w_ref[i],
                       preferred_element_type=jnp.float32)    # (Bb, F*T)
        # Tokenizer scale: weight[i+1] * x_num[:, i] (block-placed weight row).
        term = term + xc * wnum_ref[i]                        # (Bb, F*T)
        acc = term if acc is None else acc + term

    # bias[i] + Woh_i[0] + colsum(Wor_i), pre-folded per feature.
    out_ref[...] = acc + bias_ref[...]


def tokenizer_numeric_tokens_pallas(x_num, bounds, w_oh, w_ord, w_or,
                                    weight_num, bias_num, *, block_b=None):
    """Numerical-feature tokens, returned batch-major as (B, F, T)."""
    B, F = x_num.shape
    D = bounds.shape[1]
    T = w_oh.shape[2]
    FT = F * T
    f32 = jnp.float32

    # ---- parameter-side fusion (tiny, O(params) only; no batch-sized work) ----
    w_oh = w_oh.astype(f32)
    w_ord = w_ord.astype(f32)
    w_or = w_or.astype(f32)
    fused = w_oh[:, 1:, :] - w_oh[:, :-1, :] + w_ord - w_or            # (F, D, T)
    eye = jnp.eye(F, dtype=f32)
    # Block-diagonal placement over the F*T output columns.
    w_block = jnp.einsum('fdt,fg->fdgt', fused, eye).reshape(F, D, FT)   # (F, D, F*T)
    wnum_blk = jnp.einsum('ft,fg->fgt', weight_num.astype(f32),
                          eye).reshape(F, 1, FT)                         # (F, 1, F*T)
    bias_flat = (bias_num.astype(f32) + w_oh[:, 0, :]
                 + jnp.sum(w_or, axis=1)).reshape(1, FT)                 # (1, F*T)
    bnd3 = bounds.astype(f32)[:, None, :]                                # (F, 1, D)

    # Batch tiling: whole batch in one step at small B; 512-row tiles (8-aligned,
    # VMEM-friendly on v7x's 64 MiB) when B grows.
    if block_b is None:
        block_b = B if B <= 512 else 512
    grid = (pl.cdiv(B, block_b),)

    out = pl.pallas_call(
        _tokenizer_kernel,
        out_shape=jax.ShapeDtypeStruct((B, FT), f32),
        grid=grid,
        in_specs=[
            pl.BlockSpec((block_b, F), lambda b: (b, 0)),     # x (batch-tiled)
            pl.BlockSpec((F, 1, D), lambda b: (0, 0, 0)),     # bounds     (resident)
            pl.BlockSpec((F, D, FT), lambda b: (0, 0, 0)),    # fused W    (resident)
            pl.BlockSpec((F, 1, FT), lambda b: (0, 0, 0)),    # weight[1:] (resident)
            pl.BlockSpec((1, FT), lambda b: (0, 0)),          # fused bias (resident)
        ],
        out_specs=pl.BlockSpec((block_b, FT), lambda b: (b, 0)),
        compiler_params=pltpu.CompilerParams(
            dimension_semantics=("parallel",)),
    )(x_num.astype(f32), bnd3, w_block, wnum_blk, bias_flat)

    return out.reshape(B, F, T)   # contiguous, free


def tokenizer_forward_pallas(x_num, x_cat, params):
    """Full Tokenizer.forward: CLS + numerical (Pallas kernel) + categorical."""
    B, F = x_num.shape
    T = params["weight"].shape[1]

    num_tokens = tokenizer_numeric_tokens_pallas(
        x_num, params["bounds"], params["w_oh"], params["w_ord"],
        params["w_or"], params["weight"][1:], params["bias"][:F])      # (B, F, T)

    # CLS token: weight[0] * 1 + cls (+ zero bias row)
    cls_tok = jnp.broadcast_to(
        (params["weight"][0] + params["cls"][0])[None, None, :], (B, 1, T))

    # TODO(synk): categorical embedding gather + token concat kept as XLA glue;
    # a Pallas scalar-prefetch gather adds no value at these sizes.
    cat_idx = x_cat + params["cat_offsets"][None, :]
    cat_tok = params["cat_emb"][cat_idx] + params["bias"][F:][None, :, :]

    return jnp.concatenate([cls_tok, num_tokens, cat_tok], axis=1)


# ----------------------------------------------------------------------------
# Pure-JAX reference (mirrors the PyTorch forward exactly) for validation.
# ----------------------------------------------------------------------------
def tokenizer_forward_ref(x_num, x_cat, params):
    B, F = x_num.shape
    T = params["weight"].shape[1]
    f32 = jnp.float32

    # QuantizationEmbedding
    x_embs = [jnp.broadcast_to(params["cls"][0][None, None, :], (B, 1, T))]
    for i in range(F):
        bnd = params["bounds"][i]
        lower = x_num[:, i:i + 1] > bnd[None, :]
        padded = jnp.concatenate(
            [jnp.ones((B, 1), bool), lower, jnp.zeros((B, 1), bool)], axis=1)
        onehot = jnp.logical_xor(padded[:, 1:], padded[:, :-1])
        emb = (onehot.astype(f32) @ params["w_oh"][i]
               + lower.astype(f32) @ params["w_ord"][i]
               + (~lower).astype(f32) @ params["w_or"][i])
        x_embs.append(emb[:, None, :])
    x_qe = jnp.concatenate(x_embs, axis=1)                          # (B, F+1, T)

    # Tokenizer
    x_num_ext = jnp.concatenate([jnp.ones((B, 1), f32), x_num], axis=1)
    x = params["weight"][None] * x_num_ext[:, :, None]
    x = x + x_qe
    cat_idx = x_cat + params["cat_offsets"][None, :]
    x = jnp.concatenate([x, params["cat_emb"][cat_idx]], axis=1)
    bias_full = jnp.concatenate(
        [jnp.zeros((1, T), f32), params["bias"]], axis=0)
    return x + bias_full[None]


# ----------------------------------------------------------------------------
# Deterministic synthetic parameter / input construction.
# ----------------------------------------------------------------------------
def make_params_and_inputs():
    key = jax.random.PRNGKey(0)
    ks = jax.random.split(key, 12)

    B = 8             # batch
    F = 4             # d_numerical
    T = 32            # d_token
    max_size = 8      # uniform feature-representation size -> D = max_size - 1
    categories = [3, 4, 5]
    D = max_size - 1

    x_num = jax.random.normal(ks[0], (B, F), jnp.float32)
    x_cat = jnp.stack(
        [jax.random.randint(ks[1 + j], (B,), 0, categories[j], jnp.int32)
         for j in range(len(categories))], axis=1)

    # Uniform feature representation per column -> midpoint bounds (get_bounds()).
    x_np = np.asarray(x_num)
    bnds = []
    for j in range(F):
        vals = np.linspace(x_np[:, j].min(), x_np[:, j].max(), max_size)
        bnds.append((vals[1:] + vals[:-1]) / 2.0)
    bounds = jnp.asarray(np.stack(bnds, axis=0), jnp.float32)       # (F, D)

    def kaiming_uniform(k, shape, fan_in):
        bound = math.sqrt(6.0 / ((1.0 + 5.0) * fan_in))             # a = sqrt(5)
        return jax.random.uniform(k, shape, jnp.float32, -bound, bound)

    params = {
        "cls": kaiming_uniform(ks[4], (1, T), T),
        "weight": kaiming_uniform(ks[5], (F + 1, T), T),
        "bias": kaiming_uniform(ks[6], (F + len(categories), T), T),
        # nn.Linear(in, out).weight is (out, in); stored here pre-transposed as (in, out)
        "w_oh": kaiming_uniform(ks[7], (F, D + 1, T), D + 1),
        "w_ord": kaiming_uniform(ks[8], (F, D, T), D),
        "w_or": kaiming_uniform(ks[9], (F, D, T), D),
        "cat_emb": kaiming_uniform(ks[10], (sum(categories), T), T),
        "cat_offsets": jnp.asarray(
            np.cumsum([0] + categories[:-1]), jnp.int32),
        "bounds": bounds,
    }
    return x_num, x_cat, params


if __name__ == "__main__":
    x_num, x_cat, params = make_params_and_inputs()

    out = tokenizer_forward_pallas(x_num, x_cat, params)
    out = jax.block_until_ready(out)

    ref = jax.block_until_ready(tokenizer_forward_ref(x_num, x_cat, params))
    np.testing.assert_allclose(np.asarray(out), np.asarray(ref),
                               rtol=1e-4, atol=1e-4)
    assert out.shape == (x_num.shape[0],
                         1 + x_num.shape[1] + x_cat.shape[1],
                         params["weight"].shape[1])
    print("KERNEL_OK")
</pallas_src>

<mosaic_0001>
module attributes {stable_mosaic.version = 11 : i64} {
  func.func @_tokenizer_kernel(%arg0: i32, %arg1: memref<8x4xf32, #tpu.memory_space<vmem>>, %arg2: memref<4x1x7xf32, #tpu.memory_space<vmem>>, %arg3: memref<4x7x128xf32, #tpu.memory_space<vmem>>, %arg4: memref<4x1x128xf32, #tpu.memory_space<vmem>>, %arg5: memref<1x128xf32, #tpu.memory_space<vmem>>, %arg6: memref<8x128xf32, #tpu.memory_space<vmem>>) attributes {dimension_semantics = [#tpu.dimension_semantics<parallel>], iteration_bounds = array<i64: 1>, scalar_prefetch = 0 : i64, scratch_operands = 0 : i64, tpu.core_type = #tpu.core_type<tc>, window_params = [{transform_indices = @transform_0, window_bounds = array<i64: 8, 4>}, {pipeline_mode = #tpu.pipeline_mode<synchronous>, transform_indices = @transform_1, window_bounds = array<i64: 4, 1, 7>}, {pipeline_mode = #tpu.pipeline_mode<synchronous>, transform_indices = @transform_2, window_bounds = array<i64: 4, 7, 128>}, {pipeline_mode = #tpu.pipeline_mode<synchronous>, transform_indices = @transform_3, window_bounds = array<i64: 4, 1, 128>}, {pipeline_mode = #tpu.pipeline_mode<synchronous>, transform_indices = @transform_4, window_bounds = array<i64: 1, 128>}, {transform_indices = @transform_5, window_bounds = array<i64: 8, 128>}]} {
    %c0 = arith.constant 0 : index
    %c0_0 = arith.constant 0 : index
    %0 = vector.load %arg1[%c0, %c0_0] : memref<8x4xf32, #tpu.memory_space<vmem>>, vector<8x4xf32>
    %1 = vector.extract_strided_slice %0 {offsets = [0, 0], sizes = [8, 1], strides = [1, 1]} : vector<8x4xf32> to vector<8x1xf32>
    %c0_1 = arith.constant 0 : index
    %c0_2 = arith.constant 0 : index
    %c0_3 = arith.constant 0 : index
    %2 = vector.load %arg2[%c0_1, %c0_2, %c0_3] : memref<4x1x7xf32, #tpu.memory_space<vmem>>, vector<1x1x7xf32>
    %3 = vector.shape_cast %2 : vector<1x1x7xf32> to vector<1x7xf32>
    %4 = vector.broadcast %1 : vector<8x1xf32> to vector<8x7xf32>
    %5 = vector.broadcast %3 : vector<1x7xf32> to vector<8x7xf32>
    %6 = arith.cmpf ogt, %4, %5 : vector<8x7xf32>
    %7 = arith.extui %6 : vector<8x7xi1> to vector<8x7xi32>
    %8 = arith.sitofp %7 : vector<8x7xi32> to vector<8x7xf32>
    %c0_4 = arith.constant 0 : index
    %c0_5 = arith.constant 0 : index
    %c0_6 = arith.constant 0 : index
    %9 = vector.load %arg3[%c0_4, %c0_5, %c0_6] : memref<4x7x128xf32, #tpu.memory_space<vmem>>, vector<1x7x128xf32>
    %10 = vector.shape_cast %9 : vector<1x7x128xf32> to vector<7x128xf32>
    %cst = arith.constant dense<0.000000e+00> : vector<8x128xf32>
    %11 = tpu.matmul %8, %10, %cst {dimension_numbers = #tpu.dot_dimension_numbers<[1], [0], [0], [1], [0, 0, 1, 1], [], []>} : vector<8x7xf32>, vector<7x128xf32>, vector<8x128xf32> -> vector<8x128xf32>
    %c0_7 = arith.constant 0 : index
    %c0_8 = arith.constant 0 : index
    %c0_9 = arith.constant 0 : index
    %12 = vector.load %arg4[%c0_7, %c0_8, %c0_9] : memref<4x1x128xf32, #tpu.memory_space<vmem>>, vector<1x1x128xf32>
    %13 = vector.shape_cast %12 : vector<1x1x128xf32> to vector<1x128xf32>
    %14 = vector.broadcast %1 : vector<8x1xf32> to vector<8x128xf32>
    %15 = vector.broadcast %13 : vector<1x128xf32> to vector<8x128xf32>
    %16 = arith.mulf %14, %15 : vector<8x128xf32>
    %17 = arith.addf %11, %16 : vector<8x128xf32>
    %18 = vector.extract_strided_slice %0 {offsets = [0, 1], sizes = [8, 1], strides = [1, 1]} : vector<8x4xf32> to vector<8x1xf32>
    %c1 = arith.constant 1 : index
    %c0_10 = arith.constant 0 : index
    %c0_11 = arith.constant 0 : index
    %19 = vector.load %arg2[%c1, %c0_10, %c0_11] : memref<4x1x7xf32, #tpu.memory_space<vmem>>, vector<1x1x7xf32>
    %20 = vector.shape_cast %19 : vector<1x1x7xf32> to vector<1x7xf32>
    %21 = vector.broadcast %18 : vector<8x1xf32> to vector<8x7xf32>
    %22 = vector.broadcast %20 : vector<1x7xf32> to vector<8x7xf32>
    %23 = arith.cmpf ogt, %21, %22 : vector<8x7xf32>
    %24 = arith.extui %23 : vector<8x7xi1> to vector<8x7xi32>
    %25 = arith.sitofp %24 : vector<8x7xi32> to vector<8x7xf32>
    %c1_12 = arith.constant 1 : index
    %c0_13 = arith.constant 0 : index
    %c0_14 = arith.constant 0 : index
    %26 = vector.load %arg3[%c1_12, %c0_13, %c0_14] : memref<4x7x128xf32, #tpu.memory_space<vmem>>, vector<1x7x128xf32>
    %27 = vector.shape_cast %26 : vector<1x7x128xf32> to vector<7x128xf32>
    %cst_15 = arith.constant dense<0.000000e+00> : vector<8x128xf32>
    %28 = tpu.matmul %25, %27, %cst_15 {dimension_numbers = #tpu.dot_dimension_numbers<[1], [0], [0], [1], [0, 0, 1, 1], [], []>} : vector<8x7xf32>, vector<7x128xf32>, vector<8x128xf32> -> vector<8x128xf32>
    %c1_16 = arith.constant 1 : index
    %c0_17 = arith.constant 0 : index
    %c0_18 = arith.constant 0 : index
    %29 = vector.load %arg4[%c1_16, %c0_17, %c0_18] : memref<4x1x128xf32, #tpu.memory_space<vmem>>, vector<1x1x128xf32>
    %30 = vector.shape_cast %29 : vector<1x1x128xf32> to vector<1x128xf32>
    %31 = vector.broadcast %18 : vector<8x1xf32> to vector<8x128xf32>
    %32 = vector.broadcast %30 : vector<1x128xf32> to vector<8x128xf32>
    %33 = arith.mulf %31, %32 : vector<8x128xf32>
    %34 = arith.addf %28, %33 : vector<8x128xf32>
    %35 = arith.addf %17, %34 : vector<8x128xf32>
    %36 = vector.extract_strided_slice %0 {offsets = [0, 2], sizes = [8, 1], strides = [1, 1]} : vector<8x4xf32> to vector<8x1xf32>
    %c2 = arith.constant 2 : index
    %c0_19 = arith.constant 0 : index
    %c0_20 = arith.constant 0 : index
    %37 = vector.load %arg2[%c2, %c0_19, %c0_20] : memref<4x1x7xf32, #tpu.memory_space<vmem>>, vector<1x1x7xf32>
    %38 = vector.shape_cast %37 : vector<1x1x7xf32> to vector<1x7xf32>
    %39 = vector.broadcast %36 : vector<8x1xf32> to vector<8x7xf32>
    %40 = vector.broadcast %38 : vector<1x7xf32> to vector<8x7xf32>
    %41 = arith.cmpf ogt, %39, %40 : vector<8x7xf32>
    %42 = arith.extui %41 : vector<8x7xi1> to vector<8x7xi32>
    %43 = arith.sitofp %42 : vector<8x7xi32> to vector<8x7xf32>
    %c2_21 = arith.constant 2 : index
    %c0_22 = arith.constant 0 : index
    %c0_23 = arith.constant 0 : index
    %44 = vector.load %arg3[%c2_21, %c0_22, %c0_23] : memref<4x7x128xf32, #tpu.memory_space<vmem>>, vector<1x7x128xf32>
    %45 = vector.shape_cast %44 : vector<1x7x128xf32> to vector<7x128xf32>
    %cst_24 = arith.constant dense<0.000000e+00> : vector<8x128xf32>
    %46 = tpu.matmul %43, %45, %cst_24 {dimension_numbers = #tpu.dot_dimension_numbers<[1], [0], [0], [1], [0, 0, 1, 1], [], []>} : vector<8x7xf32>, vector<7x128xf32>, vector<8x128xf32> -> vector<8x128xf32>
    %c2_25 = arith.constant 2 : index
    %c0_26 = arith.constant 0 : index
    %c0_27 = arith.constant 0 : index
    %47 = vector.load %arg4[%c2_25, %c0_26, %c0_27] : memref<4x1x128xf32, #tpu.memory_space<vmem>>, vector<1x1x128xf32>
    %48 = vector.shape_cast %47 : vector<1x1x128xf32> to vector<1x128xf32>
    %49 = vector.broadcast %36 : vector<8x1xf32> to vector<8x128xf32>
    %50 = vector.broadcast %48 : vector<1x128xf32> to vector<8x128xf32>
    %51 = arith.mulf %49, %50 : vector<8x128xf32>
    %52 = arith.addf %46, %51 : vector<8x128xf32>
    %53 = arith.addf %35, %52 : vector<8x128xf32>
    %54 = vector.extract_strided_slice %0 {offsets = [0, 3], sizes = [8, 1], strides = [1, 1]} : vector<8x4xf32> to vector<8x1xf32>
    %c3 = arith.constant 3 : index
    %c0_28 = arith.constant 0 : index
    %c0_29 = arith.constant 0 : index
    %55 = vector.load %arg2[%c3, %c0_28, %c0_29] : memref<4x1x7xf32, #tpu.memory_space<vmem>>, vector<1x1x7xf32>
    %56 = vector.shape_cast %55 : vector<1x1x7xf32> to vector<1x7xf32>
    %57 = vector.broadcast %54 : vector<8x1xf32> to vector<8x7xf32>
    %58 = vector.broadcast %56 : vector<1x7xf32> to vector<8x7xf32>
    %59 = arith.cmpf ogt, %57, %58 : vector<8x7xf32>
    %60 = arith.extui %59 : vector<8x7xi1> to vector<8x7xi32>
    %61 = arith.sitofp %60 : vector<8x7xi32> to vector<8x7xf32>
    %c3_30 = arith.constant 3 : index
    %c0_31 = arith.constant 0 : index
    %c0_32 = arith.constant 0 : index
    %62 = vector.load %arg3[%c3_30, %c0_31, %c0_32] : memref<4x7x128xf32, #tpu.memory_space<vmem>>, vector<1x7x128xf32>
    %63 = vector.shape_cast %62 : vector<1x7x128xf32> to vector<7x128xf32>
    %cst_33 = arith.constant dense<0.000000e+00> : vector<8x128xf32>
    %64 = tpu.matmul %61, %63, %cst_33 {dimension_numbers = #tpu.dot_dimension_numbers<[1], [0], [0], [1], [0, 0, 1, 1], [], []>} : vector<8x7xf32>, vector<7x128xf32>, vector<8x128xf32> -> vector<8x128xf32>
    %c3_34 = arith.constant 3 : index
    %c0_35 = arith.constant 0 : index
    %c0_36 = arith.constant 0 : index
    %65 = vector.load %arg4[%c3_34, %c0_35, %c0_36] : memref<4x1x128xf32, #tpu.memory_space<vmem>>, vector<1x1x128xf32>
    %66 = vector.shape_cast %65 : vector<1x1x128xf32> to vector<1x128xf32>
    %67 = vector.broadcast %54 : vector<8x1xf32> to vector<8x128xf32>
    %68 = vector.broadcast %66 : vector<1x128xf32> to vector<8x128xf32>
    %69 = arith.mulf %67, %68 : vector<8x128xf32>
    %70 = arith.addf %64, %69 : vector<8x128xf32>
    %71 = arith.addf %53, %70 : vector<8x128xf32>
    %c0_37 = arith.constant 0 : index
    %c0_38 = arith.constant 0 : index
    %72 = vector.load %arg5[%c0_37, %c0_38] : memref<1x128xf32, #tpu.memory_space<vmem>>, vector<1x128xf32>
    %73 = vector.broadcast %72 : vector<1x128xf32> to vector<8x128xf32>
    %74 = arith.addf %71, %73 : vector<8x128xf32>
    %c0_39 = arith.constant 0 : index
    %c0_40 = arith.constant 0 : index
    %75 = vector.load %arg6[%c0_39, %c0_40] : memref<8x128xf32, #tpu.memory_space<vmem>>, vector<8x128xf32>
    tpu.vector_store %arg6[%c0_39, %c0_40], %74 {strides = array<i32>} : memref<8x128xf32, #tpu.memory_space<vmem>>, vector<8x128xf32>,
    return
  }
  func.func @transform_0(%arg0: i32) -> (i32, i32) {
    %c0_i32 = arith.constant 0 : i32
    %c0_i32_0 = arith.constant 0 : i32
    return %arg0, %c0_i32 : i32, i32
  }
  func.func @transform_1(%arg0: i32) -> (i32, i32, i32) {
    %c0_i32 = arith.constant 0 : i32
    %c0_i32_0 = arith.constant 0 : i32
    %c0_i32_1 = arith.constant 0 : i32
    %c0_i32_2 = arith.constant 0 : i32
    return %c0_i32, %c0_i32_0, %c0_i32_1 : i32, i32, i32
  }
  func.func @transform_2(%arg0: i32) -> (i32, i32, i32) {
    %c0_i32 = arith.constant 0 : i32
    %c0_i32_0 = arith.constant 0 : i32
    %c0_i32_1 = arith.constant 0 : i32
    %c0_i32_2 = arith.constant 0 : i32
    return %c0_i32, %c0_i32_0, %c0_i32_1 : i32, i32, i32
  }
  func.func @transform_3(%arg0: i32) -> (i32, i32, i32) {
    %c0_i32 = arith.constant 0 : i32
    %c0_i32_0 = arith.constant 0 : i32
    %c0_i32_1 = arith.constant 0 : i32
    %c0_i32_2 = arith.constant 0 : i32
    return %c0_i32, %c0_i32_0, %c0_i32_1 : i32, i32, i32
  }
  func.func @transform_4(%arg0: i32) -> (i32, i32) {
    %c0_i32 = arith.constant 0 : i32
    %c0_i32_0 = arith.constant 0 : i32
    %c0_i32_1 = arith.constant 0 : i32
    return %c0_i32, %c0_i32_0 : i32, i32
  }
  func.func @transform_5(%arg0: i32) -> (i32, i32) {
    %c0_i32 = arith.constant 0 : i32
    %c0_i32_0 = arith.constant 0 : i32
    return %arg0, %c0_i32 : i32, i32
  }
}

</mosaic_0001>

<bundles_post_ra>
// kernel: tpu_custom_call.1
= control target key start
LH: loop header
LB: loop body
LE: loop exit
PB: predicated region body
PF: predicated region fallthrough
CT: control target
= control target key end

     0   :  { %v550_v1 = vmov 0   ;;  %v551_v2 = vmov 2   ;;  %vm50_vm0 = vcmask 1046528   ;;  %s653_s0 = inlined_call_operand.vmem [shape: f32[8,4], index: 0, kind: input, shape index: {}]   ;;  %s654_s1 = inlined_call_operand.vmem [shape: f32[4,1,7], index: 1, kind: input, shape index: {}]   ;;  %s655_s2 = inlined_call_operand.vmem [shape: f32[4,7,128], index: 2, kind: input, shape index: {}]   ;;  %s656_s3 = inlined_call_operand.vmem [shape: f32[4,1,128], index: 3, kind: input, shape index: {}]   ;;  %s657_s4 = inlined_call_operand.vmem [shape: f32[1,128], index: 4, kind: input, shape index: {}]   ;;  %s658_s5 = inlined_call_operand.hbm [shape: f32[8,128], index: 5, kind: output, shape index: {}]  }
   0x1   :  { %v21_v0 = vld [vmem:[%s653_s0] sm:$0xff]  ;;  %521 = vset.pattern.permute.xlu0 %v550_v1  ;;  %523 = vset.pattern.permute.xlu1 %v551_v2 }
   0x2   :  { %25 = vperm.xlu0 %521, %v21_v0   ;;  %230 = vperm.xlu1 %523, %v21_v0   ;;  %v37_v3 = vld [vmem:[%s655_s2] sm:$0x7f] }
   0x3   :  { %10 = vsyncpa [#allocation3], 0  ;;  %v552_v4 = vmov 0.0   ;;  %vm553_vm1 = vmmov 0   ;;  %v554_v5 = vmov 1   ;;  %v555_v6 = vmov 3  }
   0x4   :  { %494 = vmatprep.subr.mxu0 %v552_v4  ;;  %496 = vmatprep.mubr.msk.f32.mxu0 %vm553_vm1, %v552_v4  ;;  %v464_v7 = vld [vmem:[%s655_s2 + $0x8] sm:$0x7f]  ;;  %v456_v8 = vld [vmem:[%s654_s1] ss:$0 sm:$0xff]  ;;  %v470_v9 = vld [vmem:[%s654_s1 + $0x2] ss:$0 sm:$0xff] }
   0x5   :  { %495 = vmatpush3.msk.msra.mxu0 %vm50_vm0, %v37_v3  ;;  %499 = vmatprep.subr.mxu1 %v552_v4  ;;  %vm46_vm2 = vcmask 56320   ;;  %v472_v12 = vld [vmem:[%s655_s2 + $0x10] sm:$0x7f]  ;;  %v462_v14 = vld [vmem:[%s654_s1 + $0x1] ss:$0 sm:$0xff]  ;;  %s556_s18 = smov [#allocation2]  }
   0x6   :  { %504 = vmatprep.subr.mxu0 %v552_v4  ;;  %501 = vmatprep.mubr.msk.f32.mxu1 %vm553_vm1, %v552_v4  ;;  %v478_v15 = vld [vmem:[%s654_s1 + $0x3] ss:$0 sm:$0xff]  ;;  %v480_v19 = vld [vmem:[%s655_s2 + $0x18] sm:$0x7f]  ;;  %v458_v22 = vld [vmem:[%s656_s3] ss:$0 sm:$0xff] }
   0x7   :  { %522 = vset.pattern.permute.xlu0 %v554_v5  ;;  %524 = vset.pattern.permute.xlu1 %v555_v6  ;;  %v474_v24 = vld [vmem:[%s656_s3 + $0x2] ss:$0 sm:$0xff]  ;;  %v466_v26 = vld [vmem:[%s656_s3 + $0x1] ss:$0 sm:$0xff]  ;;  %v482_v32 = vld [vmem:[%s656_s3 + $0x3] ss:$0 sm:$0xff] }
   0x8   :  { %127 = vperm.xlu0 %522, %v21_v0   ;;  %333 = vperm.xlu1 %524, %v21_v0   ;;  %v485_v44 = vld [vmem:[%s657_s4] ss:$0 sm:$0xff]  ;;  %s448_s19 = sshll.u32 %s556_s18, 4  ;;  %s449_s19 = int_to_ptr.vmem [resolvable:$true] %s448_s19 }
   0x9   :  { %500 = vmatpush3.msk.msra.mxu1 %vm50_vm0, %v464_v7  ;;  %s526_s3 = scalar_lea.vmem %s449_s19, 128  ;;  %p531_p1 = scmp.lt.s32.totalorder %s449_s19, %s449_s19 }
   0xa   :  { %509 = vmatprep.subr.mxu1 %v552_v4  ;;  %p527_p0 = scmp.ne.s32.totalorder %s449_s19, %s526_s3  ;;  %p532_p2 = scmp.lt.s32.totalorder %s526_s3, %s526_s3 }
   0xc   :  { %525 = vset.pattern.permute.xlu0 %v555_v6  ;;  %p533_p3 = por %p532_p2, %p531_p1 }
   0xe   :  { %p534_p4 = pnand %p533_p3, %p527_p0 }
  0x81   :  { %v26_v10 = vpop.permute.xlu0 %25  ;;  %v231_v11 = vpop.permute.xlu1 %230 }
  0x82   :  { %vm34_vm3 = vcmp.gt.f32.partialorder %v26_v10, %v456_v8  ;;  %vm239_vm4 = vcmp.gt.f32.partialorder %v231_v11, %v470_v9  ;;  %v45_v23 = vmul.f32 %v458_v22, %v26_v10  ;;  %v252_v29 = vmul.f32 %v474_v24, %v231_v11 }
  0x83   :  { %v457_v13 = vsel %vm34_vm3, 1.0, %v552_v4  ;;  %v471_v16 = vsel %vm239_vm4, 1.0, %v552_v4 }
  0x84   :  { %497 = vmatmul.mubr.msk.f32.vlgmr.msra.gmra.mrb[0].mxu0 %vm46_vm2, %v457_v13 }
  0x85   :  { %505 = vmatpush3.msk.msra.mxu0 %vm50_vm0, %v472_v12  ;;  %506 = vmatprep.mubr.msk.f32.mxu0 %vm553_vm1, %v552_v4 }
  0x87   :  { %v128_v17 = vpop.permute.xlu0 %127  ;;  %v334_v18 = vpop.permute.xlu1 %333 }
  0x88   :  { %vm136_vm5 = vcmp.gt.f32.partialorder %v128_v17, %v462_v14  ;;  %vm342_vm6 = vcmp.gt.f32.partialorder %v334_v18, %v478_v15  ;;  %507 = vmatmul.mubr.msk.f32.vlgmr.msra.gmra.mrb[2].mxu0 %vm46_vm2, %v471_v16  ;;  %v149_v30 = vmul.f32 %v466_v26, %v128_v17  ;;  %v355_v38 = vmul.f32 %v482_v32, %v334_v18 }
  0x89   :  { %v463_v20 = vsel %vm136_vm5, 1.0, %v552_v4  ;;  %v479_v21 = vsel %vm342_vm6, 1.0, %v552_v4 }
  0x8a   :  { %502 = vmatmul.mubr.msk.f32.vlgmr.msra.gmra.mrb[0].mxu1 %vm46_vm2, %v463_v20 }
  0x8b   :  { %510 = vmatpush3.msk.msra.mxu1 %vm50_vm0, %v480_v19  ;;  %511 = vmatprep.mubr.msk.f32.mxu1 %vm553_vm1, %v552_v4 }
  0x8e   :  { %512 = vmatmul.mubr.msk.f32.vlgmr.msra.gmra.mrb[2].mxu1 %vm46_vm2, %v479_v21 }
 0x157   :  { %v120_v25 = vpop.f32.mrb[0].mxu0 }
 0x158   :  { %v121_v27 = vadd.f32 %v120_v25, %v45_v23  ;;  %v498_v28 = vpop.f32.mrb[1].mxu0 }
 0x15b   :  { %v325_v31 = vpop.f32.mrb[2].mxu0 }
 0x15c   :  { %v326_v33 = vadd.f32 %v325_v31, %v252_v29  ;;  %v508_v35 = vpop.f32.mrb[3].mxu0 }
 0x15d   :  { %v222_v34 = vpop.f32.mrb[0].mxu1 }
 0x15e   :  { %v223_v36 = vadd.f32 %v222_v34, %v149_v30  ;;  %v503_v37 = vpop.f32.mrb[1].mxu1 }
 0x160   :  { %v226_v39 = vadd.f32 %v223_v36, %v121_v27 }
 0x161   :  { %v428_v40 = vpop.f32.mrb[2].mxu1 }
 0x162   :  { %v329_v41 = vadd.f32 %v326_v33, %v226_v39  ;;  %v429_v42 = vadd.f32 %v428_v40, %v355_v38  ;;  %v513_v43 = vpop.f32.mrb[3].mxu1 }
 0x164   :  { %v432_v45 = vadd.f32 %v429_v42, %v329_v41 }
 0x166   :  { %v440_v46 = vadd.f32 %v485_v44, %v432_v45 }
 0x168   :  { %441 = vst [vmem:[#allocation2] sm:$0xff] %v440_v46 }
 0x169   :  { %537 = shalt.err (!%p534_p4)
}
 0x16a   :  { %s538_s0 = scalar_lea.hbm %s658_s5, 128 }
 0x16b   :  { %p539_p5 = scmp.ne.s32.totalorder %s658_s5, %s538_s0  ;;  %p542_p6 = scmp.lt.u32.totalorder %s538_s0, %s658_s5 }
 0x16d   :  { %p544_p7 = pnand %p542_p6, %p539_p5 }
 0x16f   :  { %547 = shalt.err (!%p544_p7)
}
 0x170   :  { %451 = dma.vmem_to_hbm [thread:$0]  %s449_s19, 128, %s658_s5, [#allocation3]  }
 0x171   :  { %548 = dma.done.wait [#allocation3], 128  }
 0x172   :  { %549 = vsyncadd [#allocation3], 4294967168 }
 0x173   :  { %455 = vsyncpa [#allocation3], 1 }

</bundles_post_ra>
